<compile_context>
chip_gen: v7x
topology: tpu7x:2x2x1
jax: 0.10.0
libtpu: 0.0.40
codegen_flags: <defaults>
</compile_context>

<pallas_src>
import functools

import numpy as np
import jax
import jax.numpy as jnp
from jax import lax
from jax.experimental import pallas as pl
from jax.experimental.pallas import tpu as pltpu

MARGIN = 0.5  # cfg.α — deterministic synthetic value


def _round_up(x, m):
    return ((x + m - 1) // m) * m


def _cluster_sums_kernel(x_ref, lbl_ref, uniq_ref, acc_ref):
    """Accumulate per-class sums of L2-normalized feature rows.

    x_ref    : [3, tn, Dp]       features (native dtype), one N-tile
    lbl_ref  : [1, tn]           int32 labels for this tile
    uniq_ref : [c_pad, 1]        int32 unique labels (grid-resident)
    acc_ref  : [1, 3, c_pad, Dp] f32 output block; constant index along the
               reduction axis -> acts as the accumulator.
    """
    i = pl.program_id(1)

    @pl.when(i == 0)
    def _init():
        acc_ref[...] = jnp.zeros_like(acc_ref)

    x = x_ref[...].astype(jnp.float32)                               # [3, tn, Dp]

    # Row norms. The eps guard keeps all-zero (N-padding) rows finite; real
    # rows are unaffected (matches PyTorch divide-by-norm for nonzero rows).
    sumsq = jnp.sum(x * x, axis=-1)                                  # [3, tn]
    inv_norm = lax.rsqrt(jnp.maximum(sumsq, 1e-24))                  # [3, tn]

    # Per-tile one-hot membership built in-kernel (no [C, N] mask in HBM).
    onehot = (lbl_ref[...] == uniq_ref[...]).astype(jnp.float32)     # [c_pad, tn]

    # Fold 1/||row|| into the mask columns instead of scaling x:
    #   sum_n 1[label_n == u] * x[n,:]/||x[n,:]||  ==  (onehot * inv_norm) @ x
    # -> no f32 "normalized x" temporary, 3 small MXU matmuls per tile.
    for k in range(3):
        m = onehot * inv_norm[k:k + 1, :]                            # [c_pad, tn]
        acc_ref[0, k, :, :] = acc_ref[0, k, :, :] + jnp.dot(
            m, x[k], preferred_element_type=jnp.float32)             # [c_pad, Dp]


@functools.partial(jax.jit, static_argnames=("num_classes", "margin"))
def cluster_loss(feat1, feat2, feat3, label1, *, num_classes, margin=MARGIN):
    n, d = feat1.shape
    labels = label1.astype(jnp.int32)

    # ---- static tiling decisions (shapes are static under jit) -------------
    P = 2                                    # "parallel" axis: both TCs on v7x
    c_pad = _round_up(max(num_classes, 1), 8)
    dp = _round_up(d, 128)                   # lane-dense feature blocks
    itemsize = jnp.dtype(feat1.dtype).itemsize

    def vmem_estimate(tn):
        feat_in = 2 * 3 * tn * dp * itemsize          # double-buffered feature blocks
        lbl_in = 2 * 8 * max(tn, 128) * 4             # padded label blocks
        acc_out = 2 * 3 * c_pad * dp * 4              # resident accumulator block
        temps = 3 * 3 * tn * dp * 4                   # f32 cast + products + staging
        return feat_in + lbl_in + acc_out + temps + (1 << 20)

    try:   # per-generation budget (v7x: 64 MiB/core; v5e/v6e: 128 MiB)
        vmem_cap = pltpu.get_tpu_info().vmem_capacity_bytes
    except Exception:
        vmem_cap = 64 << 20
    budget = min(40 << 20, int(0.6 * vmem_cap))

    tn = min(512, _round_up(pl.cdiv(n, P), 128))      # >=512 rows for large N
    while vmem_estimate(tn) > budget and tn > 128:
        tn = max(128, ((tn // 2) // 128) * 128)       # keep a multiple of 128

    n_pad = _round_up(n, P * tn)
    T = n_pad // (P * tn)                             # inner reduction steps

    # ---- input preparation (features stay in their native dtype) -----------
    x = jnp.stack([feat1, feat2, feat3], axis=0)                     # [3, N, D]
    x = jnp.pad(x, ((0, 0), (0, n_pad - n), (0, dp - d)))            # exact zero pad

    sentinel_uniq = jnp.iinfo(jnp.int32).min          # fills unused unique slots
    sentinel_pad = sentinel_uniq + 1                  # fills padded label rows
    # NOTE: matches torch.unique only if the batch has at most `num_classes`
    # distinct labels; extra classes would be silently dropped.
    uniq = jnp.unique(labels, size=c_pad, fill_value=sentinel_uniq)  # [c_pad]
    cnt = jnp.sum((labels[None, :] == uniq[:, None]).astype(jnp.float32), axis=1)

    labels_pad = jnp.full((n_pad,), sentinel_pad, jnp.int32).at[:n].set(labels)
    labels2d = labels_pad.reshape(1, n_pad)
    uniq2d = uniq.reshape(c_pad, 1)

    vmem_limit = int(min(max(vmem_estimate(tn) * 3 // 2, 32 << 20), 64 << 20))

    partial = pl.pallas_call(
        _cluster_sums_kernel,
        out_shape=jax.ShapeDtypeStruct((P, 3, c_pad, dp), jnp.float32),
        grid=(P, T),
        in_specs=[
            pl.BlockSpec((3, tn, dp), lambda p, i: (0, p * T + i, 0)),
            pl.BlockSpec((1, tn), lambda p, i: (0, p * T + i)),
            pl.BlockSpec((c_pad, 1), lambda p, i: (0, 0)),
        ],
        out_specs=pl.BlockSpec((1, 3, c_pad, dp), lambda p, i: (p, 0, 0, 0)),
        compiler_params=pltpu.CompilerParams(
            dimension_semantics=("parallel", "arbitrary"),
            vmem_limit_bytes=vmem_limit,
        ),
    )(x, labels2d, uniq2d)

    # ---- tiny O(C*D) finalize in plain XLA (combines the two TC partials) ---
    sums = jnp.sum(partial, axis=0)                                  # [3, c_pad, Dp]
    means = sums / jnp.maximum(cnt, 1.0)[None, :, None]              # per-class centers
    d12 = jnp.sum((means[0] - means[1]) ** 2, axis=-1)
    d13 = jnp.sum((means[0] - means[2]) ** 2, axis=-1)
    d23 = jnp.sum((means[1] - means[2]) ** 2, axis=-1)
    per_class = jnp.maximum(d12 + d13 + d23 - margin, 0.0)
    return jnp.sum(jnp.where(cnt > 0, per_class, 0.0))


def cluster_loss_reference(feat1, feat2, feat3, label1, margin=MARGIN):
    """Pure NumPy reference mirroring the PyTorch forward exactly."""
    def nrm(x):
        x = np.asarray(x, np.float64)
        return x / np.sqrt((x ** 2).sum(1, keepdims=True))

    f1, f2, f3 = nrm(feat1), nrm(feat2), nrm(feat3)
    label = np.asarray(label1)
    total = 0.0
    for u in np.unique(label):
        idx = label == u
        c1, c2, c3 = f1[idx].mean(0), f2[idx].mean(0), f3[idx].mean(0)
        dd = ((c1 - c2) ** 2).sum() + ((c1 - c3) ** 2).sum() + ((c2 - c3) ** 2).sum()
        total += max(0.0, dd - margin)
    return total


if __name__ == "__main__":
    N, D, C = 8, 32, 3  # 8 samples, 32-dim features, 3 classes
    key = jax.random.PRNGKey(0)
    k1, k2, k3 = jax.random.split(key, 3)
    # Keep features bf16 across HBM (kernel upcasts to f32 per tile).
    feat1 = jax.random.normal(k1, (N, D), dtype=jnp.float32).astype(jnp.bfloat16)
    feat2 = jax.random.normal(k2, (N, D), dtype=jnp.float32).astype(jnp.bfloat16)
    feat3 = jax.random.normal(k3, (N, D), dtype=jnp.float32).astype(jnp.bfloat16)
    label1 = jnp.array([0, 1, 2, 0, 1, 2, 0, 1], dtype=jnp.int32)

    loss = cluster_loss(feat1, feat2, feat3, label1, num_classes=C)
    loss = jax.block_until_ready(loss)

    ref = cluster_loss_reference(
        np.asarray(feat1.astype(jnp.float32)),
        np.asarray(feat2.astype(jnp.float32)),
        np.asarray(feat3.astype(jnp.float32)),
        np.asarray(label1), margin=MARGIN)
    np.testing.assert_allclose(np.asarray(loss, np.float64), ref,
                               rtol=1e-4, atol=1e-5)

    print("KERNEL_OK")
</pallas_src>

<mosaic_0001>
module attributes {stable_mosaic.version = 11 : i64} {
  func.func @_cluster_sums_kernel(%arg0: i32, %arg1: i32, %arg2: memref<3x128x128xbf16, #tpu.memory_space<vmem>>, %arg3: memref<1x128xi32, #tpu.memory_space<vmem>>, %arg4: memref<8x1xi32, #tpu.memory_space<vmem>>, %arg5: memref<1x3x8x128xf32, #tpu.memory_space<vmem>>) attributes {dimension_semantics = [#tpu.dimension_semantics<parallel>, #tpu.dimension_semantics<arbitrary>], iteration_bounds = array<i64: 2, 1>, scalar_prefetch = 0 : i64, scratch_operands = 0 : i64, tpu.core_type = #tpu.core_type<tc>, window_params = [{transform_indices = @transform_0, window_bounds = array<i64: 3, 128, 128>}, {transform_indices = @transform_1, window_bounds = array<i64: 1, 128>}, {pipeline_mode = #tpu.pipeline_mode<synchronous>, transform_indices = @transform_2, window_bounds = array<i64: 8, 1>}, {transform_indices = @transform_3, window_bounds = array<i64: 1, 3, 8, 128>}]} {
    %c0_i32 = arith.constant 0 : i32
    %0 = arith.cmpi eq, %arg1, %c0_i32 : i32
    %1 = arith.extui %0 : i1 to i32
    %c0_i32_0 = arith.constant 0 : i32
    %2 = arith.cmpi ne, %1, %c0_i32_0 : i32
    scf.if %2 {
      %cst_33 = arith.constant 0.000000e+00 : f32
      %53 = vector.broadcast %cst_33 : f32 to vector<1x3x8x128xf32>
      %c0_34 = arith.constant 0 : index
      %c0_35 = arith.constant 0 : index
      %c0_36 = arith.constant 0 : index
      %c0_37 = arith.constant 0 : index
      %54 = vector.load %arg5[%c0_34, %c0_35, %c0_36, %c0_37] : memref<1x3x8x128xf32, #tpu.memory_space<vmem>>, vector<1x3x8x128xf32>
      tpu.vector_store %arg5[%c0_34, %c0_35, %c0_36, %c0_37], %53 {strides = array<i32>} : memref<1x3x8x128xf32, #tpu.memory_space<vmem>>, vector<1x3x8x128xf32>,
    } else {
    }
    %c0 = arith.constant 0 : index
    %c0_1 = arith.constant 0 : index
    %c0_2 = arith.constant 0 : index
    %3 = vector.load %arg2[%c0, %c0_1, %c0_2] : memref<3x128x128xbf16, #tpu.memory_space<vmem>>, vector<3x128x128xbf16>
    %4 = arith.extf %3 : vector<3x128x128xbf16> to vector<3x128x128xf32>
    %5 = arith.mulf %4, %4 : vector<3x128x128xf32>
    %cst = arith.constant dense<0.000000e+00> : vector<3x128xf32>
    %6 = vector.multi_reduction <add>, %5, %cst [2] : vector<3x128x128xf32> to vector<3x128xf32>
    %cst_3 = arith.constant 1.000000e-24 : f32
    %7 = vector.broadcast %cst_3 : f32 to vector<3x128xf32>
    %8 = arith.maximumf %6, %7 : vector<3x128xf32>
    %9 = math.rsqrt %8 : vector<3x128xf32>
    %c0_4 = arith.constant 0 : index
    %c0_5 = arith.constant 0 : index
    %10 = vector.load %arg3[%c0_4, %c0_5] : memref<1x128xi32, #tpu.memory_space<vmem>>, vector<1x128xi32>
    %c0_6 = arith.constant 0 : index
    %c0_7 = arith.constant 0 : index
    %11 = vector.load %arg4[%c0_6, %c0_7] : memref<8x1xi32, #tpu.memory_space<vmem>>, vector<8x1xi32>
    %12 = vector.broadcast %10 : vector<1x128xi32> to vector<8x128xi32>
    %13 = vector.broadcast %11 : vector<8x1xi32> to vector<8x128xi32>
    %14 = arith.cmpi eq, %12, %13 : vector<8x128xi32>
    %15 = arith.extui %14 : vector<8x128xi1> to vector<8x128xi32>
    %16 = arith.sitofp %15 : vector<8x128xi32> to vector<8x128xf32>
    %17 = vector.extract_strided_slice %9 {offsets = [0, 0], sizes = [1, 128], strides = [1, 1]} : vector<3x128xf32> to vector<1x128xf32>
    %18 = vector.broadcast %17 : vector<1x128xf32> to vector<8x128xf32>
    %19 = arith.mulf %16, %18 : vector<8x128xf32>
    %c0_8 = arith.constant 0 : index
    %c0_9 = arith.constant 0 : index
    %c0_10 = arith.constant 0 : index
    %c0_11 = arith.constant 0 : index
    %20 = vector.load %arg5[%c0_8, %c0_9, %c0_10, %c0_11] : memref<1x3x8x128xf32, #tpu.memory_space<vmem>>, vector<1x1x8x128xf32>
    %21 = vector.shape_cast %20 : vector<1x1x8x128xf32> to vector<8x128xf32>
    %22 = vector.extract_strided_slice %4 {offsets = [0, 0, 0], sizes = [1, 128, 128], strides = [1, 1, 1]} : vector<3x128x128xf32> to vector<1x128x128xf32>
    %23 = vector.shape_cast %22 : vector<1x128x128xf32> to vector<128x128xf32>
    %cst_12 = arith.constant dense<0.000000e+00> : vector<8x128xf32>
    %24 = tpu.matmul %19, %23, %cst_12 {dimension_numbers = #tpu.dot_dimension_numbers<[1], [0], [0], [1], [0, 0, 1, 1], [], []>} : vector<8x128xf32>, vector<128x128xf32>, vector<8x128xf32> -> vector<8x128xf32>
    %25 = arith.addf %21, %24 : vector<8x128xf32>
    %c0_13 = arith.constant 0 : index
    %c0_14 = arith.constant 0 : index
    %c0_15 = arith.constant 0 : index
    %c0_16 = arith.constant 0 : index
    %26 = vector.load %arg5[%c0_13, %c0_14, %c0_15, %c0_16] : memref<1x3x8x128xf32, #tpu.memory_space<vmem>>, vector<1x1x8x128xf32>
    %27 = vector.shape_cast %26 : vector<1x1x8x128xf32> to vector<8x128xf32>
    %28 = vector.shape_cast %25 : vector<8x128xf32> to vector<1x1x8x128xf32>
    tpu.vector_store %arg5[%c0_13, %c0_14, %c0_15, %c0_16], %28 {strides = array<i32>} : memref<1x3x8x128xf32, #tpu.memory_space<vmem>>, vector<1x1x8x128xf32>,
    %29 = vector.extract_strided_slice %9 {offsets = [1, 0], sizes = [1, 128], strides = [1, 1]} : vector<3x128xf32> to vector<1x128xf32>
    %30 = vector.broadcast %29 : vector<1x128xf32> to vector<8x128xf32>
    %31 = arith.mulf %16, %30 : vector<8x128xf32>
    %c0_17 = arith.constant 0 : index
    %c1 = arith.constant 1 : index
    %c0_18 = arith.constant 0 : index
    %c0_19 = arith.constant 0 : index
    %32 = vector.load %arg5[%c0_17, %c1, %c0_18, %c0_19] : memref<1x3x8x128xf32, #tpu.memory_space<vmem>>, vector<1x1x8x128xf32>
    %33 = vector.shape_cast %32 : vector<1x1x8x128xf32> to vector<8x128xf32>
    %34 = vector.extract_strided_slice %4 {offsets = [1, 0, 0], sizes = [1, 128, 128], strides = [1, 1, 1]} : vector<3x128x128xf32> to vector<1x128x128xf32>
    %35 = vector.shape_cast %34 : vector<1x128x128xf32> to vector<128x128xf32>
    %cst_20 = arith.constant dense<0.000000e+00> : vector<8x128xf32>
    %36 = tpu.matmul %31, %35, %cst_20 {dimension_numbers = #tpu.dot_dimension_numbers<[1], [0], [0], [1], [0, 0, 1, 1], [], []>} : vector<8x128xf32>, vector<128x128xf32>, vector<8x128xf32> -> vector<8x128xf32>
    %37 = arith.addf %33, %36 : vector<8x128xf32>
    %c0_21 = arith.constant 0 : index
    %c1_22 = arith.constant 1 : index
    %c0_23 = arith.constant 0 : index
    %c0_24 = arith.constant 0 : index
    %38 = vector.load %arg5[%c0_21, %c1_22, %c0_23, %c0_24] : memref<1x3x8x128xf32, #tpu.memory_space<vmem>>, vector<1x1x8x128xf32>
    %39 = vector.shape_cast %38 : vector<1x1x8x128xf32> to vector<8x128xf32>
    %40 = vector.shape_cast %37 : vector<8x128xf32> to vector<1x1x8x128xf32>
    tpu.vector_store %arg5[%c0_21, %c1_22, %c0_23, %c0_24], %40 {strides = array<i32>} : memref<1x3x8x128xf32, #tpu.memory_space<vmem>>, vector<1x1x8x128xf32>,
    %41 = vector.extract_strided_slice %9 {offsets = [2, 0], sizes = [1, 128], strides = [1, 1]} : vector<3x128xf32> to vector<1x128xf32>
    %42 = vector.broadcast %41 : vector<1x128xf32> to vector<8x128xf32>
    %43 = arith.mulf %16, %42 : vector<8x128xf32>
    %c0_25 = arith.constant 0 : index
    %c2 = arith.constant 2 : index
    %c0_26 = arith.constant 0 : index
    %c0_27 = arith.constant 0 : index
    %44 = vector.load %arg5[%c0_25, %c2, %c0_26, %c0_27] : memref<1x3x8x128xf32, #tpu.memory_space<vmem>>, vector<1x1x8x128xf32>
    %45 = vector.shape_cast %44 : vector<1x1x8x128xf32> to vector<8x128xf32>
    %46 = vector.extract_strided_slice %4 {offsets = [2, 0, 0], sizes = [1, 128, 128], strides = [1, 1, 1]} : vector<3x128x128xf32> to vector<1x128x128xf32>
    %47 = vector.shape_cast %46 : vector<1x128x128xf32> to vector<128x128xf32>
    %cst_28 = arith.constant dense<0.000000e+00> : vector<8x128xf32>
    %48 = tpu.matmul %43, %47, %cst_28 {dimension_numbers = #tpu.dot_dimension_numbers<[1], [0], [0], [1], [0, 0, 1, 1], [], []>} : vector<8x128xf32>, vector<128x128xf32>, vector<8x128xf32> -> vector<8x128xf32>
    %49 = arith.addf %45, %48 : vector<8x128xf32>
    %c0_29 = arith.constant 0 : index
    %c2_30 = arith.constant 2 : index
    %c0_31 = arith.constant 0 : index
    %c0_32 = arith.constant 0 : index
    %50 = vector.load %arg5[%c0_29, %c2_30, %c0_31, %c0_32] : memref<1x3x8x128xf32, #tpu.memory_space<vmem>>, vector<1x1x8x128xf32>
    %51 = vector.shape_cast %50 : vector<1x1x8x128xf32> to vector<8x128xf32>
    %52 = vector.shape_cast %49 : vector<8x128xf32> to vector<1x1x8x128xf32>
    tpu.vector_store %arg5[%c0_29, %c2_30, %c0_31, %c0_32], %52 {strides = array<i32>} : memref<1x3x8x128xf32, #tpu.memory_space<vmem>>, vector<1x1x8x128xf32>,
    return
  }
  func.func @transform_0(%arg0: i32, %arg1: i32) -> (i32, i32, i32) {
    %c1_i32 = arith.constant 1 : i32
    %0 = arith.muli %arg0, %c1_i32 : i32
    %1 = arith.addi %0, %arg1 : i32
    %c0_i32 = arith.constant 0 : i32
    %c0_i32_0 = arith.constant 0 : i32
    %c0_i32_1 = arith.constant 0 : i32
    return %c0_i32, %1, %c0_i32_0 : i32, i32, i32
  }
  func.func @transform_1(%arg0: i32, %arg1: i32) -> (i32, i32) {
    %c1_i32 = arith.constant 1 : i32
    %0 = arith.muli %arg0, %c1_i32 : i32
    %1 = arith.addi %0, %arg1 : i32
    %c0_i32 = arith.constant 0 : i32
    %c0_i32_0 = arith.constant 0 : i32
    return %c0_i32, %1 : i32, i32
  }
  func.func @transform_2(%arg0: i32, %arg1: i32) -> (i32, i32) {
    %c0_i32 = arith.constant 0 : i32
    %c0_i32_0 = arith.constant 0 : i32
    %c0_i32_1 = arith.constant 0 : i32
    return %c0_i32, %c0_i32_0 : i32, i32
  }
  func.func @transform_3(%arg0: i32, %arg1: i32) -> (i32, i32, i32, i32) {
    %c0_i32 = arith.constant 0 : i32
    %c0_i32_0 = arith.constant 0 : i32
    %c0_i32_1 = arith.constant 0 : i32
    %c0_i32_2 = arith.constant 0 : i32
    return %arg0, %c0_i32, %c0_i32_0, %c0_i32_1 : i32, i32, i32, i32
  }
}

</mosaic_0001>

<bundles_post_ra>
// kernel: cluster_loss.1
= control target key start
LH: loop header
LB: loop body
LE: loop exit
PB: predicated region body
PF: predicated region fallthrough
CT: control target
= control target key end

     0   :  { %s2013_s12 = smov 0   ;;  %s2015_s13 = smov 0   ;;  %s2464_s0 = inlined_call_operand.vmem [shape: bf16[3,256,128], index: 0, kind: input, shape index: {}]   ;;  %s2465_s1 = inlined_call_operand.vmem [shape: s32[1,256], index: 1, kind: input, shape index: {}]   ;;  %s2466_s2 = inlined_call_operand.vmem [shape: s32[8,1], index: 2, kind: input, shape index: {}]   ;;  %s2467_s3 = inlined_call_operand.vmem [shape: f32[2,3,8,128], index: 3, kind: output, shape index: {}]  }
   0x1   :  { %s2017_s14 = smov 0   ;;  %s2019_s15 = smov 0  }
   0x2   :  { %s2021_s16 = smov 0  }
   0x3 LB: > { %s25_s17 = sadd.s32 1, %s1983_s15  ;;  %p41_p1 = scmp.ne.s32.totalorder %s1975_s13, %s1971_s12  ;;  %s1987_s16 = sphi %s2021_s16, %s13_s16   ;;  %s1983_s15 = sphi %s2019_s15, %s2471_s15   ;;  %s1979_s14 = sphi %s2017_s14, %s2470_s14   ;;  %s1975_s13 = sphi %s2015_s13, %s2469_s13   ;;  %s1971_s12 = sphi %s2013_s12, %s2468_s12  }
   0x4   : > { %p27_p0 = scmp.ge.s32.totalorder %s25_s17, 2  ;;  %p42_p2 = scmp.eq.s32.totalorder %s1987_s16, 0 }
   0x5   : > { %s34_s19 = sadd.s32 1, %s1975_s13  ;;  %p1444_p5 = scmp.ge.s32.totalorder %s1987_s16, 2 }
   0x6   : > { %s2473_s17 = smov (%p27_p0, %s25_s17), 0  ;;  %p43_p3 = por %p42_p2, %p41_p1 }
   0x7   : > { %s31_s18 = ssub.s32 %s1983_s15, %s2473_s17  ;;  %145 = sbr.rel (%p1444_p5) target bundleno = 31 (0x1f), region = 20 }
   0x8   : > { %p32_p4 = scmp.eq.s32.totalorder %s31_s18, 0 }
   0xa   : > { %s2048_s20 = scalar_select %p32_p4, %s1975_s13, %s34_s19  }
   0xe   : > { %148 = sbr.rel (!%p43_p3) target bundleno = 31 (0x1f), region = 24  ;;  %s150_s21 = sand.u32 (%p43_p3), 1, %s1975_s13  }
   0xf   : > { %s1457_s22 = sshll.u32 (%p43_p3), %s1983_s15, 6  ;;  %s1805_s23 = smul.u32 (%p43_p3), 192, %s150_s21 }
  0x10   : > { %s2056_s26 = scalar_lea.vmem (%p43_p3), %s2464_s0, %s1457_s22 }
  0x11   : > { %v172_v0 = vld [vmem:[%s2056_s26] sm:$0xff] (%p43_p3)   ;;  %v176_v1 = vld [vmem:[%s2056_s26 + $0x8] sm:$0xff] (%p43_p3)   ;;  %v180_v2 = vld [vmem:[%s2056_s26 + $0x10] sm:$0xff] (%p43_p3)   ;;  %s2064_s27 = scalar_lea.vmem (%p43_p3), [#allocation2], %s1805_s23 }
  0x12   : > { %v184_v3 = vld [vmem:[%s2056_s26 + $0x18] sm:$0xff] (%p43_p3)   ;;  %v188_v4 = vld [vmem:[%s2056_s26 + $0x20] sm:$0xff] (%p43_p3)   ;;  %v192_v5 = vld [vmem:[%s2056_s26 + $0x28] sm:$0xff] (%p43_p3)   ;;  %173 = vst [vmem:[%s2064_s27] sm:$0xff] (%p43_p3), %v172_v0  }
  0x13   : > { %177 = vst [vmem:[%s2064_s27 + $0x8] sm:$0xff] (%p43_p3), %v176_v1   ;;  %181 = vst [vmem:[%s2064_s27 + $0x10] sm:$0xff] (%p43_p3), %v180_v2   ;;  %v196_v6 = vld [vmem:[%s2056_s26 + $0x30] sm:$0xff] (%p43_p3)   ;;  %v200_v7 = vld [vmem:[%s2056_s26 + $0x38] sm:$0xff] (%p43_p3)  }
  0x14   : > { %185 = vst [vmem:[%s2064_s27 + $0x18] sm:$0xff] (%p43_p3), %v184_v3   ;;  %189 = vst [vmem:[%s2064_s27 + $0x20] sm:$0xff] (%p43_p3), %v188_v4   ;;  %v204_v8 = vld [vmem:[%s2056_s26 + $0x80] sm:$0xff] (%p43_p3)   ;;  %v208_v9 = vld [vmem:[%s2056_s26 + $0x88] sm:$0xff] (%p43_p3)  }
  0x15   : > { %193 = vst [vmem:[%s2064_s27 + $0x28] sm:$0xff] %v192_v5   ;;  %197 = vst [vmem:[%s2064_s27 + $0x30] sm:$0xff] %v196_v6   ;;  %v212_v10 = vld [vmem:[%s2056_s26 + $0x90] sm:$0xff]   ;;  %v216_v11 = vld [vmem:[%s2056_s26 + $0x98] sm:$0xff]  }
  0x16   : > { %201 = vst [vmem:[%s2064_s27 + $0x38] sm:$0xff] %v200_v7   ;;  %205 = vst [vmem:[%s2064_s27 + $0x40] sm:$0xff] %v204_v8   ;;  %v220_v12 = vld [vmem:[%s2056_s26 + $0xa0] sm:$0xff]   ;;  %v224_v13 = vld [vmem:[%s2056_s26 + $0xa8] sm:$0xff]  }
  0x17   : > { %209 = vst [vmem:[%s2064_s27 + $0x48] sm:$0xff] %v208_v9   ;;  %213 = vst [vmem:[%s2064_s27 + $0x50] sm:$0xff] %v212_v10   ;;  %v228_v14 = vld [vmem:[%s2056_s26 + $0xb0] sm:$0xff]   ;;  %v232_v15 = vld [vmem:[%s2056_s26 + $0xb8] sm:$0xff]  }
  0x18   : > { %217 = vst [vmem:[%s2064_s27 + $0x58] sm:$0xff] %v216_v11   ;;  %221 = vst [vmem:[%s2064_s27 + $0x60] sm:$0xff] %v220_v12   ;;  %v236_v16 = vld [vmem:[%s2056_s26 + $0x100] sm:$0xff]   ;;  %v240_v17 = vld [vmem:[%s2056_s26 + $0x108] sm:$0xff]  }
  0x19   : > { %225 = vst [vmem:[%s2064_s27 + $0x68] sm:$0xff] %v224_v13   ;;  %229 = vst [vmem:[%s2064_s27 + $0x70] sm:$0xff] %v228_v14   ;;  %v244_v18 = vld [vmem:[%s2056_s26 + $0x110] sm:$0xff]   ;;  %v248_v19 = vld [vmem:[%s2056_s26 + $0x118] sm:$0xff]  }
  0x1a   : > { %233 = vst [vmem:[%s2064_s27 + $0x78] sm:$0xff] %v232_v15   ;;  %237 = vst [vmem:[%s2064_s27 + $0x80] sm:$0xff] %v236_v16   ;;  %v252_v20 = vld [vmem:[%s2056_s26 + $0x120] sm:$0xff]   ;;  %v256_v21 = vld [vmem:[%s2056_s26 + $0x128] sm:$0xff]  }
  0x1b   : > { %241 = vst [vmem:[%s2064_s27 + $0x88] sm:$0xff] %v240_v17   ;;  %245 = vst [vmem:[%s2064_s27 + $0x90] sm:$0xff] %v244_v18   ;;  %v260_v22 = vld [vmem:[%s2056_s26 + $0x130] sm:$0xff]   ;;  %v264_v23 = vld [vmem:[%s2056_s26 + $0x138] sm:$0xff]  }
  0x1c   : > { %249 = vst [vmem:[%s2064_s27 + $0x98] sm:$0xff] %v248_v19   ;;  %253 = vst [vmem:[%s2064_s27 + $0xa0] sm:$0xff] %v252_v20  }
  0x1d   : > { %257 = vst [vmem:[%s2064_s27 + $0xa8] sm:$0xff] %v256_v21   ;;  %261 = vst [vmem:[%s2064_s27 + $0xb0] sm:$0xff] %v260_v22  }
  0x1e   : > { %265 = vst [vmem:[%s2064_s27 + $0xb8] sm:$0xff] %v264_v23  }
  0x1f PF: > { %p1447_p6 = scmp.ge.s32.totalorder %s1987_s16, 1  ;;  %p393_p7 = scmp.lt.s32.totalorder %s1987_s16, 3 }
  0x21   : > { %p394_p8 = pnand %p1447_p6, %p393_p7 }
  0x22   : > { %s400_s28 = sand.u32 (!%p394_p8), 1, %s1971_s12   ;;  %v1989_v24 = vmov (!%p394_p8), 0   ;;  %vm1991_vm0 = vmmov (!%p394_p8), 0   ;;  %vm821_vm1 = vcmask (!%p394_p8), 130112   ;;  %vm828_vm2 = vcmask (!%p394_p8), 195712   ;;  %p430_p9 = scmp.lt.s32.totalorder (!%p394_p8), %s1979_s14, 1 }
  0x23   : > { %397 = sbr.rel (%p394_p8) target bundleno = 545 (0x221), region = 69  ;;  %1852 = vset.pattern.permute.xlu0 (!%p394_p8), %v1989_v24  ;;  %vm835_vm3 = vcmask (!%p394_p8), 261312   ;;  %vm842_vm4 = vcmask (!%p394_p8), 326912   ;;  %vm849_vm5 = vcmask (!%p394_p8), 392512   ;;  %vm856_vm6 = vcmask (!%p394_p8), 458112  }
  0x24   : > { %s1806_s29 = smul.u32 (!%p394_p8), 192, %s400_s28  ;;  %vm863_vm7 = vcmask (!%p394_p8), 523712   ;;  %vm870_vm8 = vcmask (!%p394_p8), 589312   ;;  %vm877_vm9 = vcmask (!%p394_p8), 654912   ;;  %vm884_vm10 = vcmask (!%p394_p8), 720512  }
  0x25   : > { %vm891_vm11 = vcmask (!%p394_p8), 786112   ;;  %vm898_vm12 = vcmask (!%p394_p8), 851712   ;;  %vm905_vm13 = vcmask (!%p394_p8), 917312   ;;  %vm912_vm14 = vcmask (!%p394_p8), 982912  }
  0x26   : > { %s2111_s30 = scalar_lea.vmem (!%p394_p8), [#allocation2], %s1806_s29  ;;  %vm919_vm15 = vcmask (!%p394_p8), 1048512  }
  0x27   : > { %v2114_v25 = vld [vmem:[%s2111_s30 + $0x8] sm:$0xff] (!%p394_p8)   ;;  %v2117_v26 = vld [vmem:[%s2111_s30] sm:$0xff] (!%p394_p8)   ;;  %v2124_v31 = vld [vmem:[%s2111_s30 + $0x10] sm:$0xff] (!%p394_p8)  }
  0x28   : > { %v1464_v27 = vunpack.c.l.bf16 (!%p394_p8), %v2114_v25  ;;  %v1460_v28 = vunpack.c.l.bf16 (!%p394_p8), %v2117_v26  ;;  %v1465_v29 = vunpack.c.h.bf16 (!%p394_p8), %v2114_v25  ;;  %v1461_v30 = vunpack.c.h.bf16 (!%p394_p8), %v2117_v26  ;;  %v2129_v38 = vld [vmem:[%s2111_s30 + $0x18] sm:$0xff] (!%p394_p8)   ;;  %v2134_v43 = vld [vmem:[%s2111_s30 + $0x20] sm:$0xff] (!%p394_p8)   ;;  %v2139_v48 = vld [vmem:[%s2111_s30 + $0x28] sm:$0xff] (!%p394_p8)  }
  0x29   : > { %v1469_v36 = vunpack.c.h.bf16 (!%p394_p8), %v2124_v31  ;;  %v1468_v37 = vunpack.c.l.bf16 (!%p394_p8), %v2124_v31  ;;  %v1473_v41 = vunpack.c.h.bf16 (!%p394_p8), %v2129_v38  ;;  %v1472_v42 = vunpack.c.l.bf16 (!%p394_p8), %v2129_v38  ;;  %v2144_v53 = vld [vmem:[%s2111_s30 + $0x30] sm:$0xff] (!%p394_p8)   ;;  %v2149_v58 = vld [vmem:[%s2111_s30 + $0x38] sm:$0xff] (!%p394_p8)   ;;  %v1561_v63 = vld [vmem:[%s2111_s30 + $0x40] sm:$0xff] (!%p394_p8)  }
  0x2a   : > { %v544_v32 = vmul.f32 %v1464_v27, %v1464_v27  ;;  %v542_v33 = vmul.f32 %v1460_v28, %v1460_v28  ;;  %v545_v34 = vmul.f32 %v1465_v29, %v1465_v29  ;;  %v543_v35 = vmul.f32 %v1461_v30, %v1461_v30  ;;  %v2155_v4 = vld [vmem:[%s2111_s30 + $0x80] sm:$0xff]   ;;  %v2160_v9 = vld [vmem:[%s2111_s30 + $0x88] sm:$0xff]   ;;  %v2166_v19 = vld [vmem:[%s2111_s30 + $0x90] sm:$0xff]   ;;  %s2475_s14 = smov (!%p430_p9, %s1979_s14), 1 }
  0x2b   : > { %v547_v39 = vmul.f32 %v1469_v36, %v1469_v36  ;;  %v546_v40 = vmul.f32 %v1468_v37, %v1468_v37  ;;  %v549_v44 = vmul.f32 %v1473_v41, %v1473_v41  ;;  %v548_v45 = vmul.f32 %v1472_v42, %v1472_v42  ;;  %v1562_v10 = vld [vmem:[%s2111_s30 + $0x48] sm:$0xff]   ;;  %v1563_v20 = vld [vmem:[%s2111_s30 + $0x50] sm:$0xff]   ;;  %v2175_v37 = vld [vmem:[%s2111_s30 + $0x98] sm:$0xff]   ;;  %s432_s8 = scalar_lea.vmem %s2465_s1, %s2475_s14  ;;  %s1807_s9 = smul.u32 24, %s2475_s14 }
  0x2c   : > { %594 = vadd.xlane.f32.xlu1 %v544_v32  ;;  %590 = vadd.xlane.f32.xlu0 %v542_v33  ;;  %v1477_v46 = vunpack.c.h.bf16 %v2134_v43  ;;  %v1476_v47 = vunpack.c.l.bf16 %v2134_v43  ;;  %v1481_v51 = vunpack.c.h.bf16 %v2139_v48  ;;  %v1480_v52 = vunpack.c.l.bf16 %v2139_v48  ;;  %v1564_v32 = vld [vmem:[%s2111_s30 + $0x58] sm:$0xff]  }
  0x2d   : > { %v1485_v56 = vunpack.c.h.bf16 %v2144_v53  ;;  %v1484_v57 = vunpack.c.l.bf16 %v2144_v53  ;;  %v1489_v61 = vunpack.c.h.bf16 %v2149_v58  ;;  %v1488_v62 = vunpack.c.l.bf16 %v2149_v58  ;;  %s438_s12 = scalar_lea.vmem %s2467_s3, %s1807_s9 }
  0x2e   : > { %v551_v49 = vmul.f32 %v1477_v46, %v1477_v46  ;;  %v550_v50 = vmul.f32 %v1476_v47, %v1476_v47  ;;  %v553_v54 = vmul.f32 %v1481_v51, %v1481_v51  ;;  %v552_v55 = vmul.f32 %v1480_v52, %v1480_v52  ;;  %v2193_v46 = vld [vmem:[%s2111_s30 + $0xa0] sm:$0xff]   ;;  %v1567_v52 = vld [vmem:[%s2111_s30 + $0x70] sm:$0xff]  }
  0x2f   : > { %v555_v59 = vmul.f32 %v1485_v56, %v1485_v56  ;;  %v554_v60 = vmul.f32 %v1484_v57, %v1484_v57  ;;  %v557_v0 = vmul.f32 %v1489_v61, %v1489_v61  ;;  %v556_v1 = vmul.f32 %v1488_v62, %v1488_v62 }
  0x30   : > { %596 = vadd.xlane.f32.xlu1 %v545_v34  ;;  %592 = vadd.xlane.f32.xlu0 %v543_v35  ;;  %v1493_v2 = vunpack.c.h.bf16 %v1561_v63  ;;  %v1492_v3 = vunpack.c.l.bf16 %v1561_v63  ;;  %v1525_v7 = vunpack.c.h.bf16 %v2155_v4  ;;  %v1524_v8 = vunpack.c.l.bf16 %v2155_v4 }
  0x31   : > { %v1528_v13 = vunpack.c.l.bf16 %v2160_v9  ;;  %v1496_v14 = vunpack.c.l.bf16 %v1562_v10  ;;  %v1529_v17 = vunpack.c.h.bf16 %v2160_v9  ;;  %v1497_v18 = vunpack.c.h.bf16 %v1562_v10 }
  0x32   : > { %v559_v5 = vmul.f32 %v1493_v2, %v1493_v2  ;;  %v558_v6 = vmul.f32 %v1492_v3, %v1492_v3  ;;  %v575_v11 = vmul.f32 %v1525_v7, %v1525_v7  ;;  %v574_v12 = vmul.f32 %v1524_v8, %v1524_v8 }
  0x33   : > { %v576_v15 = vmul.f32 %v1528_v13, %v1528_v13  ;;  %v560_v16 = vmul.f32 %v1496_v14, %v1496_v14  ;;  %v577_v21 = vmul.f32 %v1529_v17, %v1529_v17  ;;  %v561_v22 = vmul.f32 %v1497_v18, %v1497_v18  ;;  %v2229_v14 = vld [vmem:[%s2111_s30 + $0xb8] sm:$0xff]  }
  0x34   : > { %600 = vadd.xlane.f32.xlu1 %v547_v39  ;;  %598 = vadd.xlane.f32.xlu0 %v546_v40  ;;  %v1532_v23 = vunpack.c.l.bf16 %v2166_v19  ;;  %v1500_v24 = vunpack.c.l.bf16 %v1563_v20  ;;  %v1533_v29 = vunpack.c.h.bf16 %v2166_v19  ;;  %v1501_v30 = vunpack.c.h.bf16 %v1563_v20 }
  0x35   : > { %v1990_v33 = vmov 0.0|0.0   ;;  %v1504_v36 = vunpack.c.l.bf16 %v1564_v32  ;;  %v1536_v40 = vunpack.c.l.bf16 %v2175_v37  ;;  %v1505_v41 = vunpack.c.h.bf16 %v1564_v32 }
  0x36   : > { %v578_v27 = vmul.f32 %v1532_v23, %v1532_v23  ;;  %v562_v28 = vmul.f32 %v1500_v24, %v1500_v24  ;;  %1733 = vmatprep.subr.bf16.mxu0 %v1990_v33  ;;  %1757 = vmatprep.subr.bf16.mxu1 %v1990_v33  ;;  %v579_v34 = vmul.f32 %v1533_v29, %v1533_v29  ;;  %v1540_v47 = vunpack.c.l.bf16 %v2193_v46 }
  0x37   : > { %v563_v35 = vmul.f32 %v1501_v30, %v1501_v30  ;;  %1735 = vmatpush3.bf16.msra.mxu0 %v2117_v26  ;;  %1759 = vmatpush3.bf16.msra.mxu1 %v1561_v63  ;;  %v564_v39 = vmul.f32 %v1504_v36, %v1504_v36  ;;  %v580_v26 = vmul.f32 %v1536_v40, %v1536_v40  ;;  %v1992_v56 = vmov 0.0  }
  0x38   : > { %604 = vadd.xlane.f32.xlu1 %v549_v44  ;;  %602 = vadd.xlane.f32.xlu0 %v548_v45  ;;  %v565_v42 = vmul.f32 %v1505_v41, %v1505_v41  ;;  %v1565_v44 = vld [vmem:[%s2111_s30 + $0x60] sm:$0xff]   ;;  %v1517_v7 = vunpack.c.h.bf16 %v1567_v52 }
  0x39   : > { %1736 = vmatprep.subr.bf16.mxu0 %v1990_v33  ;;  %1760 = vmatprep.subr.bf16.mxu1 %v1990_v33  ;;  %v1508_v45 = vunpack.c.l.bf16 %v1565_v44  ;;  %v1509_v51 = vunpack.c.h.bf16 %v1565_v44 }
  0x3a   : > { %1660 = vmatprep.mubr.msk.f32.mxu0 %vm1991_vm0, %v1992_v56  ;;  %1695 = vmatprep.mubr.msk.f32.mxu1 %vm1991_vm0, %v1992_v56 }
  0x3b   : > { %1738 = vmatpush3.bf16.msra.mxu0 %v2114_v25  ;;  %1762 = vmatpush3.bf16.msra.mxu1 %v1562_v10  ;;  %v1537_v25 = vunpack.c.h.bf16 %v2175_v37  ;;  %v571_v10 = vmul.f32 %v1517_v7, %v1517_v7 }
  0x3c   : > { %608 = vadd.xlane.f32.xlu1 %v551_v49  ;;  %606 = vadd.xlane.f32.xlu0 %v550_v50  ;;  %v1566_v49 = vld [vmem:[%s2111_s30 + $0x68] sm:$0xff]   ;;  %v582_v50 = vmul.f32 %v1540_v47, %v1540_v47 }
  0x3d   : > { %1739 = vmatprep.subr.bf16.mxu0 %v1990_v33  ;;  %1763 = vmatprep.subr.bf16.mxu1 %v1990_v33  ;;  %v1512_v57 = vunpack.c.l.bf16 %v1566_v49  ;;  %v1513_v62 = vunpack.c.h.bf16 %v1566_v49 }
  0x3f   : > { %1741 = vmatpush3.bf16.msra.mxu0 %v2124_v31  ;;  %1765 = vmatpush3.bf16.msra.mxu1 %v1563_v20  ;;  %v581_v31 = vmul.f32 %v1537_v25, %v1537_v25  ;;  %v569_v63 = vmul.f32 %v1513_v62, %v1513_v62 }
  0x40   : > { %612 = vadd.xlane.f32.xlu1 %v553_v54  ;;  %610 = vadd.xlane.f32.xlu0 %v552_v55  ;;  %v1541_v54 = vunpack.c.h.bf16 %v2193_v46  ;;  %v1568_v55 = vld [vmem:[%s2111_s30 + $0x78] sm:$0xff]  }
  0x41   : > { %1742 = vmatprep.subr.bf16.mxu0 %v1990_v33  ;;  %1766 = vmatprep.subr.bf16.mxu1 %v1990_v33  ;;  %v1520_v13 = vunpack.c.l.bf16 %v1568_v55  ;;  %v1521_v18 = vunpack.c.h.bf16 %v1568_v55 }
  0x43   : > { %1744 = vmatpush3.bf16.msra.mxu0 %v2129_v38  ;;  %1768 = vmatpush3.bf16.msra.mxu1 %v1564_v32  ;;  %v566_v38 = vmul.f32 %v1508_v45, %v1508_v45  ;;  %v573_v20 = vmul.f32 %v1521_v18, %v1521_v18 }
  0x44   : > { %616 = vadd.xlane.f32.xlu1 %v555_v59  ;;  %614 = vadd.xlane.f32.xlu0 %v554_v60  ;;  %v2219_v59 = vld [vmem:[%s2111_s30 + $0xa8] sm:$0xff]   ;;  %v568_v60 = vmul.f32 %v1512_v57, %v1512_v57 }
  0x45   : > { %1745 = vmatprep.subr.bf16.mxu0 %v1990_v33  ;;  %1769 = vmatprep.subr.bf16.mxu1 %v1990_v33 }
  0x47   : > { %1747 = vmatpush3.bf16.msra.mxu0 %v2134_v43  ;;  %1771 = vmatpush3.bf16.msra.mxu1 %v1565_v44  ;;  %v783_v43 = vld [vmem:[%s2466_s2] sm:$0xff] }
  0x48   : > { %620 = vadd.xlane.f32.xlu1 %v557_v0  ;;  %618 = vadd.xlane.f32.xlu0 %v556_v1  ;;  %v1516_v0 = vunpack.c.l.bf16 %v1567_v52  ;;  %v2223_v1 = vld [vmem:[%s2111_s30 + $0xb0] sm:$0xff]  }
  0x49   : > { %1748 = vmatprep.subr.bf16.mxu0 %v1990_v33  ;;  %1772 = vmatprep.subr.bf16.mxu1 %v1990_v33  ;;  %v1548_v3 = vunpack.c.l.bf16 %v2223_v1 }
  0x4a   : > { %v570_v2 = vmul.f32 %v1516_v0, %v1516_v0 }
  0x4b   : > { %1750 = vmatpush3.bf16.msra.mxu0 %v2139_v48  ;;  %1774 = vmatpush3.bf16.msra.mxu1 %v1566_v49  ;;  %v567_v48 = vmul.f32 %v1509_v51, %v1509_v51 }
  0x4c   : > { %624 = vadd.xlane.f32.xlu1 %v559_v5  ;;  %622 = vadd.xlane.f32.xlu0 %v558_v6  ;;  %v1545_v5 = vunpack.c.h.bf16 %v2219_v59  ;;  %v586_v6 = vmul.f32 %v1548_v3, %v1548_v3 }
  0x4d   : > { %1751 = vmatprep.subr.bf16.mxu0 %v1990_v33  ;;  %1775 = vmatprep.subr.bf16.mxu1 %v1990_v33 }
  0x4e   : > { %v585_v8 = vmul.f32 %v1545_v5, %v1545_v5 }
  0x4f   : > { %1753 = vmatpush3.bf16.msra.mxu0 %v2144_v53  ;;  %1777 = vmatpush3.bf16.msra.mxu1 %v1567_v52  ;;  %v583_v53 = vmul.f32 %v1541_v54, %v1541_v54 }
  0x50   : > { %656 = vadd.xlane.f32.xlu1 %v575_v11  ;;  %654 = vadd.xlane.f32.xlu0 %v574_v12  ;;  %v1549_v11 = vunpack.c.h.bf16 %v2223_v1 }
  0x51   : > { %1754 = vmatprep.subr.bf16.mxu0 %v1990_v33  ;;  %1778 = vmatprep.subr.bf16.mxu1 %v1990_v33 }
  0x52   : > { %v587_v12 = vmul.f32 %v1549_v11, %v1549_v11 }
  0x53   : > { %1756 = vmatpush3.bf16.msra.mxu0 %v2149_v58  ;;  %1780 = vmatpush3.bf16.msra.mxu1 %v1568_v55  ;;  %v1544_v58 = vunpack.c.l.bf16 %v2219_v59 }
  0x54   : > { %658 = vadd.xlane.f32.xlu1 %v576_v15  ;;  %626 = vadd.xlane.f32.xlu0 %v560_v16  ;;  %v572_v15 = vmul.f32 %v1520_v13, %v1520_v13  ;;  %v1552_v16 = vunpack.c.l.bf16 %v2229_v14 }
  0x55   : > { %1781 = vmatprep.subr.bf16.mxu0 %v1990_v33  ;;  %v584_v61 = vmul.f32 %v1544_v58, %v1544_v58 }
  0x56   : > { %v588_v17 = vmul.f32 %v1552_v16, %v1552_v16 }
  0x58   : > { %660 = vadd.xlane.f32.xlu1 %v577_v21  ;;  %628 = vadd.xlane.f32.xlu0 %v561_v22  ;;  %v1553_v21 = vunpack.c.h.bf16 %v2229_v14 }
  0x5a   : > { %v589_v22 = vmul.f32 %v1553_v21, %v1553_v21 }
  0x5c   : > { %662 = vadd.xlane.f32.xlu1 %v578_v27  ;;  %630 = vadd.xlane.f32.xlu0 %v562_v28 }
  0x60   : > { %664 = vadd.xlane.f32.xlu1 %v579_v34  ;;  %632 = vadd.xlane.f32.xlu0 %v563_v35  ;;  %v810_v35 = vlaneseq }
  0x62   : > { %v2236_v45 = vshrl.u32 %v810_v35, 7 }
  0x64   : > { %634 = vadd.xlane.f32.xlu1 %v564_v39 }
  0x68   : > { %666 = vadd.xlane.f32.xlu1 %v580_v26  ;;  %v2233_v26 = vand.u32 127, %v810_v35 }
  0x6a   : > { %v816_v44 = vadd.s32 4294967288, %v2233_v26  ;;  %v823_v54 = vadd.s32 4294967280, %v2233_v26  ;;  %v830_v57 = vadd.s32 4294967272, %v2233_v26  ;;  %v858_v5 = vadd.s32 4294967240, %v2233_v26 }
  0x6b   : > { %v851_v18 = vadd.s32 4294967248, %v2233_v26 }
  0x6c   : > { %636 = vadd.xlane.f32.xlu1 %v565_v42  ;;  %v2245_v51 = vsub.s32 %v816_v44, %v2236_v45  ;;  %v2255_v0 = vsub.s32 %v823_v54, %v2236_v45  ;;  %v2276_v21 = vsub.s32 %v858_v5, %v2236_v45 }
  0x70   : > { %668 = vadd.xlane.f32.xlu1 %v581_v31 }
  0x74   : > { %638 = vadd.xlane.f32.xlu1 %v566_v38 }
  0x76   : > { %789 = vperm.xlu0 %1852, %v783_v43  }
  0x78   : > { %670 = vadd.xlane.f32.xlu1 %v582_v50  ;;  %v2242_v50 = vsub.s32 %v2233_v26, %v2236_v45 }
  0x7c   : > { %640 = vadd.xlane.f32.xlu1 %v567_v48 }
  0x80   : > { %672 = vadd.xlane.f32.xlu1 %v583_v53 }
  0x84   : > { %642 = vadd.xlane.f32.xlu1 %v568_v60  ;;  %v844_v60 = vadd.s32 4294967256, %v2233_v26 }
  0x88   : > { %674 = vadd.xlane.f32.xlu1 %v584_v61 }
  0x8c   : > { %644 = vadd.xlane.f32.xlu1 %v569_v63 }
  0x90   : > { %646 = vadd.xlane.f32.xlu1 %v570_v2  ;;  %v837_v2 = vadd.s32 4294967264, %v2233_v26 }
  0x94   : > { %678 = vadd.xlane.f32.xlu1 %v586_v6 }
  0x95   : > { %676 = vadd.xlane.f32.xlu0 %v585_v8 }
  0x98   : > { %648 = vadd.xlane.f32.xlu1 %v571_v10  ;;  %v2264_v10 = vsub.s32 %v830_v57, %v2236_v45 }
  0x9c   : > { %680 = vadd.xlane.f32.xlu1 %v587_v12  ;;  %v2268_v12 = vsub.s32 %v844_v60, %v2236_v45  ;;  %v879_v60 = vadd.s32 4294967216, %v2233_v26 }
  0xa0   : > { %650 = vadd.xlane.f32.xlu1 %v572_v15 }
  0xa4   : > { %682 = vadd.xlane.f32.xlu1 %v588_v17  ;;  %v2272_v17 = vsub.s32 %v837_v2, %v2236_v45 }
  0xa8   : > { %652 = vadd.xlane.f32.xlu1 %v573_v20 }
  0xac   : > { %684 = vadd.xlane.f32.xlu1 %v589_v22  ;;  %v872_v22 = vadd.s32 4294967224, %v2233_v26 }
  0xb9   : > { %v595_v23 = vpop.xlane.xlu1 %594  ;;  %v591_v24 = vpop.xlane.xlu0 %590 }
  0xba   : > { %v686_v29 = vmax.f32 %v591_v24, 1e-24  ;;  %v688_v40 = vmax.f32 %v595_v23, 1e-24 }
  0xbc   : > { %1853 = vrsqrt.f32 %v686_v29 }
  0xbd   : > { %v597_v27 = vpop.xlane.xlu1 %596  ;;  %v593_v28 = vpop.xlane.xlu0 %592 }
  0xbe   : > { %v687_v34 = vmax.f32 %v593_v28, 1e-24  ;;  %v689_v25 = vmax.f32 %v597_v27, 1e-24 }
  0xc0   : > { %1855 = vrsqrt.f32 %v687_v34  ;;  %v865_v34 = vadd.s32 4294967232, %v2233_v26 }
  0xc1   : > { %v601_v30 = vpop.xlane.xlu1 %600  ;;  %v599_v32 = vpop.xlane.xlu0 %598  ;;  %1857 = vrsqrt.f32 %v688_v40  ;;  %v2285_v40 = vsub.s32 %v851_v18, %v2236_v45 }
  0xc2   : > { %v690_v31 = vmax.f32 %v599_v32, 1e-24  ;;  %1859 = vrsqrt.f32 %v689_v25  ;;  %v691_v49 = vmax.f32 %v601_v30, 1e-24  ;;  %v2289_v25 = vsub.s32 %v872_v22, %v2236_v45 }
  0xc4   : > { %1861 = vrsqrt.f32 %v690_v31 }
  0xc5   : > { %v605_v36 = vpop.xlane.xlu1 %604  ;;  %v603_v39 = vpop.xlane.xlu0 %602  ;;  %1863 = vrsqrt.f32 %v691_v49 }
  0xc6   : > { %v1854_v43 = vpop.eup %1853  ;;  %v692_v52 = vmax.f32 %v603_v39, 1e-24  ;;  %v693_v58 = vmax.f32 %v605_v36, 1e-24 }
  0xc7   : > { %v815_v61 = vrot.slane %v1854_v43, %v2242_v50 }
  0xc8   : > { %1865 = vrsqrt.f32 %v692_v52  ;;  %v2294_v52 = vsub.s32 %v865_v34, %v2236_v45 }
  0xc9   : > { %v609_v41 = vpop.xlane.xlu1 %608  ;;  %v607_v42 = vpop.xlane.xlu0 %606  ;;  %1867 = vrsqrt.f32 %v693_v58 }
  0xca   : > { %v1856_v48 = vpop.eup %1855  ;;  %v694_v63 = vmax.f32 %v607_v42, 1e-24  ;;  %v695_v6 = vmax.f32 %v609_v41, 1e-24 }
  0xcb   : > { %v820_v62 = vrot.slane %v1856_v48, %v2245_v51  ;;  %v1858_v3 = vpop.eup %1857 }
  0xcc   : > { %1869 = vrsqrt.f32 %v694_v63  ;;  %v1860_v15 = vpop.eup %1859  ;;  %v827_v16 = vrot.slane %v1858_v3, %v2255_v0 }
  0xcd   : > { %v2238_v38 = vpop.xlane.xlu1 %612  ;;  %v611_v47 = vpop.xlane.xlu0 %610  ;;  %v822_v11 = vsel %vm821_vm1, %v820_v62, %v815_v61  ;;  %1871 = vrsqrt.f32 %v695_v6  ;;  %v834_v32 = vrot.slane %v1860_v15, %v2264_v10  ;;  %v893_v61 = vadd.s32 4294967200, %v2233_v26 }
  0xce   : > { %v696_v13 = vmax.f32 %v611_v47, 1e-24  ;;  %v1862_v20 = vpop.eup %1861  ;;  %v829_v27 = vsel %vm828_vm2, %v827_v16, %v822_v11  ;;  %v697_v28 = vmax.f32 %v2238_v38, 1e-24  ;;  %v2308_v16 = vsub.s32 %v879_v60, %v2236_v45 }
  0xcf   : > { %v1864_v36 = vpop.eup %1863  ;;  %v841_v39 = vrot.slane %v1862_v20, %v2272_v17  ;;  %v836_v42 = vsel %vm835_vm3, %v834_v32, %v829_v27  ;;  %v900_v20 = vadd.s32 4294967192, %v2233_v26  ;;  %v2315_v27 = vsub.s32 %v893_v61, %v2236_v45 }
  0xd0   : > { %1873 = vrsqrt.f32 %v696_v13  ;;  %v848_v43 = vrot.slane %v1864_v36, %v2268_v12  ;;  %v907_v36 = vadd.s32 4294967184, %v2233_v26 }
  0xd1   : > { %v2248_v55 = vpop.xlane.xlu1 %616  ;;  %v615_v53 = vpop.xlane.xlu0 %614 }
  0xd2   : > { %v698_v35 = vmax.f32 %v615_v53, 1e-24  ;;  %v1866_v41 = vpop.eup %1865  ;;  %v699_v38 = vmax.f32 %v2248_v55, 1e-24  ;;  %v843_v53 = vsel %vm842_vm4, %v841_v39, %v836_v42  ;;  %v886_v55 = vadd.s32 4294967208, %v2233_v26 }
  0xd3   : > { %v1868_v54 = vpop.eup %1867  ;;  %v855_v57 = vrot.slane %v1866_v41, %v2285_v40  ;;  %v850_v11 = vsel %vm849_vm5, %v848_v43, %v843_v53 }
  0xd5   : > { %v2259_v7 = vpop.xlane.xlu1 %620  ;;  %v2261_v8 = vpop.xlane.xlu0 %618  ;;  %v857_v13 = vsel %vm856_vm6, %v855_v57, %v850_v11  ;;  %v914_v57 = vadd.s32 4294967176, %v2233_v26 }
  0xd6   : > { %v700_v48 = vmax.f32 %v2261_v8, 1e-24  ;;  %v1870_v58 = vpop.eup %1869  ;;  %v701_v2 = vmax.f32 %v2259_v7, 1e-24  ;;  %v862_v8 = vrot.slane %v1868_v54, %v2276_v21  ;;  %v2311_v7 = vsub.s32 %v886_v55, %v2236_v45 }
  0xd7   : > { %v1872_v6 = vpop.eup %1871  ;;  %v869_v15 = vrot.slane %v1870_v58, %v2294_v52 }
  0xd8   : > { %v876_v32 = vrot.slane %v1872_v6, %v2289_v25  ;;  %v864_v34 = vsel %vm863_vm7, %v862_v8, %v857_v13 }
  0xd9   : > { %v625_v23 = vpop.xlane.xlu1 %624  ;;  %v623_v24 = vpop.xlane.xlu0 %622  ;;  %v871_v41 = vsel %vm870_vm8, %v869_v15, %v864_v34 }
  0xda   : > { %v703_v29 = vmax.f32 %v625_v23, 1e-24  ;;  %v702_v30 = vmax.f32 %v623_v24, 1e-24  ;;  %v1874_v18 = vpop.eup %1873  ;;  %v878_v61 = vsel %vm877_vm9, %v876_v32, %v871_v41  ;;  %v1449_v41 = vld [vmem:[%s432_s8] ss:$0 sm:$0xff] }
  0xdb   : > { %v883_v42 = vrot.slane %v1874_v18, %v2308_v16 }
  0xdc   : > { %1875 = vrsqrt.f32 %v703_v29 }
  0xdd   : > { %1877 = vrsqrt.f32 %v702_v30  ;;  %v657_v44 = vpop.xlane.xlu1 %656  ;;  %v655_v31 = vpop.xlane.xlu0 %654  ;;  %v885_v26 = vsel %vm884_vm10, %v883_v42, %v878_v61 }
  0xde   : > { %1879 = vrsqrt.f32 %v697_v28  ;;  %v719_v47 = vmax.f32 %v657_v44, 1e-24  ;;  %v718_v49 = vmax.f32 %v655_v31, 1e-24 }
  0xdf   : > { %1881 = vrsqrt.f32 %v698_v35 }
  0xe0   : > { %1883 = vrsqrt.f32 %v719_v47 }
  0xe1   : > { %1885 = vrsqrt.f32 %v718_v49  ;;  %v659_v62 = vpop.xlane.xlu1 %658  ;;  %v627_v63 = vpop.xlane.xlu0 %626 }
  0xe2   : > { %1887 = vrsqrt.f32 %v699_v38  ;;  %v720_v3 = vmax.f32 %v659_v62, 1e-24  ;;  %v704_v5 = vmax.f32 %v627_v63, 1e-24  ;;  %v2326_v38 = vsub.s32 %v900_v20, %v2236_v45 }
  0xe3   : > { %1889 = vrsqrt.f32 %v700_v48  ;;  %v2334_v62 = vsub.s32 %v907_v36, %v2236_v45 }
  0xe4   : > { %1891 = vrsqrt.f32 %v720_v3 }
  0xe5   : > { %1893 = vrsqrt.f32 %v704_v5  ;;  %v661_v22 = vpop.xlane.xlu1 %660  ;;  %v629_v23 = vpop.xlane.xlu0 %628 }
  0xe6   : > { %v1876_v24 = vpop.eup %1875  ;;  %1895 = vrsqrt.f32 %v701_v2  ;;  %v721_v28 = vmax.f32 %v661_v22, 1e-24  ;;  %v705_v29 = vmax.f32 %v629_v23, 1e-24  ;;  %v2349_v23 = vsub.s32 %v914_v57, %v2236_v45 }
  0xe7   : > { %v1878_v30 = vpop.eup %1877  ;;  %v1031_v35 = vrot.slane %v1876_v24, %v2245_v51 }
  0xe8   : > { %v1880_v39 = vpop.eup %1879  ;;  %v1027_v44 = vrot.slane %v1878_v30, %v2242_v50  ;;  %1897 = vrsqrt.f32 %v721_v28 }
  0xe9   : > { %v1882_v31 = vpop.eup %1881  ;;  %1899 = vrsqrt.f32 %v705_v29  ;;  %v663_v47 = vpop.xlane.xlu1 %662  ;;  %v890_v58 = vrot.slane %v1880_v39, %v2311_v7 }
  0xea   : > { %v631_v49 = vpop.xlane.xlu0 %630  ;;  %v1884_v43 = vpop.eup %1883  ;;  %v1032_v48 = vsel %vm821_vm1, %v1031_v35, %v1027_v44  ;;  %v722_v54 = vmax.f32 %v663_v47, 1e-24  ;;  %v897_v2 = vrot.slane %v1882_v31, %v2315_v27 }
  0xeb   : > { %v706_v53 = vmax.f32 %v631_v49, 1e-24  ;;  %v1886_v60 = vpop.eup %1885  ;;  %v1208_v55 = vrot.slane %v1884_v43, %v2245_v51  ;;  %v892_v22 = vsel %vm891_vm11, %v890_v58, %v885_v26 }
  0xec   : > { %v1888_v63 = vpop.eup %1887  ;;  %v1204_v3 = vrot.slane %v1886_v60, %v2242_v50  ;;  %1901 = vrsqrt.f32 %v722_v54  ;;  %v899_v29 = vsel %vm898_vm12, %v897_v2, %v892_v22 }
  0xed   : > { %v1890_v5 = vpop.eup %1889  ;;  %1903 = vrsqrt.f32 %v706_v53  ;;  %v665_v6 = vpop.xlane.xlu1 %664  ;;  %v904_v50 = vrot.slane %v1888_v63, %v2326_v38 }
  0xee   : > { %v633_v51 = vpop.xlane.xlu0 %632  ;;  %v1892_v8 = vpop.eup %1891  ;;  %v1209_v11 = vsel %vm821_vm1, %v1208_v55, %v1204_v3  ;;  %v723_v13 = vmax.f32 %v665_v6, 1e-24  ;;  %v911_v30 = vrot.slane %v1890_v5, %v2334_v62 }
  0xef   : > { %v707_v15 = vmax.f32 %v633_v51, 1e-24  ;;  %v1894_v18 = vpop.eup %1893  ;;  %v1213_v20 = vrot.slane %v1892_v8, %v2255_v0  ;;  %v906_v42 = vsel %vm905_vm13, %v904_v50, %v899_v29 }
  0xf0   : > { %v1896_v24 = vpop.eup %1895  ;;  %v1036_v28 = vrot.slane %v1894_v18, %v2255_v0  ;;  %1905 = vrsqrt.f32 %v723_v13  ;;  %v913_v47 = vsel %vm912_vm14, %v911_v30, %v906_v42 }
  0xf1   : > { %v1214_v32 = vsel %vm828_vm2, %v1213_v20, %v1209_v11  ;;  %1907 = vrsqrt.f32 %v707_v15  ;;  %v635_v34 = vpop.xlane.xlu1 %634  ;;  %v918_v44 = vrot.slane %v1896_v24, %v2349_v23 }
  0xf2   : > { %v1898_v35 = vpop.eup %1897  ;;  %v1037_v45 = vsel %vm828_vm2, %v1036_v28, %v1032_v48  ;;  %v708_v36 = vmax.f32 %v635_v34, 1e-24 }
  0xf3   : > { %v1900_v39 = vpop.eup %1899  ;;  %v1218_v0 = vrot.slane %v1898_v35, %v2264_v10  ;;  %v920_v55 = vsel %vm919_vm15, %v918_v44, %v913_v47 }
  0xf4   : > { %v1041_v31 = vrot.slane %v1900_v39, %v2264_v10  ;;  %1909 = vrsqrt.f32 %v708_v36 }
  0xf5   : > { %v1219_v49 = vsel %vm835_vm3, %v1218_v0, %v1214_v32  ;;  %v667_v43 = vpop.xlane.xlu1 %666  ;;  %v790_v54 = vpop.permute.xlu0 %789 }
  0xf6   : > { %v1902_v48 = vpop.eup %1901  ;;  %v1042_v53 = vsel %vm835_vm3, %v1041_v31, %v1037_v45  ;;  %v724_v57 = vmax.f32 %v667_v43, 1e-24  ;;  %vm791_vm1 = vcmp.eq.s32.totalorder %v1449_v41, %v790_v54 }
  0xf7   : > { %v1904_v60 = vpop.eup %1903  ;;  %v1223_v58 = vrot.slane %v1902_v48, %v2272_v17  ;;  %v2370_v10 = vsel %vm791_vm1, 1.0, %v1992_v56 }
  0xf8   : > { %v1046_v61 = vrot.slane %v1904_v60, %v2272_v17  ;;  %1911 = vrsqrt.f32 %v724_v57  ;;  %v934_v63 = vmul.f32 %v2370_v10, %v920_v55 }
  0xf9   : > { %v1224_v2 = vsel %vm842_vm4, %v1223_v58, %v1219_v49  ;;  %v637_v3 = vpop.xlane.xlu1 %636 }
  0xfa   : > { %v1906_v26 = vpop.eup %1905  ;;  %v1047_v5 = vsel %vm842_vm4, %v1046_v61, %v1042_v53  ;;  %v709_v6 = vmax.f32 %v637_v3, 1e-24  ;;  %1661 = vmatmul.mubr.f32.vlgmr.msra.gmra.mrb[0].mxu0 %v934_v63 }
  0xfb   : > { %v1908_v51 = vpop.eup %1907  ;;  %v1228_v8 = vrot.slane %v1906_v26, %v2268_v12  ;;  %1783 = vmatpush3.bf16.msra.mxu0 %v2155_v4  ;;  %1730 = vmatprep.mubr.msk.f32.mxu0 %vm1991_vm0, %v1992_v56 }
  0xfc   : > { %v1051_v17 = vrot.slane %v1908_v51, %v2268_v12  ;;  %1913 = vrsqrt.f32 %v709_v6  ;;  %1784 = vmatprep.subr.bf16.mxu0 %v1990_v33 }
  0xfd   : > { %v1229_v11 = vsel %vm849_vm5, %v1228_v8, %v1224_v2  ;;  %v669_v13 = vpop.xlane.xlu1 %668 }
  0xfe   : > { %v1910_v15 = vpop.eup %1909  ;;  %v1052_v18 = vsel %vm849_vm5, %v1051_v17, %v1047_v5  ;;  %v725_v50 = vmax.f32 %v669_v13, 1e-24 }
  0xff   : > { %v1056_v20 = vrot.slane %v1910_v15, %v2285_v40  ;;  %1786 = vmatpush3.bf16.msra.mxu0 %v2160_v9 }
 0x100   : > { %1915 = vrsqrt.f32 %v725_v50  ;;  %1787 = vmatprep.subr.bf16.mxu0 %v1990_v33 }
 0x101   : > { %v1057_v4 = vsel %vm856_vm6, %v1056_v20, %v1052_v18  ;;  %v639_v56 = vpop.xlane.xlu1 %638 }
 0x102   : > { %v1912_v12 = vpop.eup %1911  ;;  %v710_v22 = vmax.f32 %v639_v56, 1e-24 }
 0x103   : > { %v1233_v24 = vrot.slane %v1912_v12, %v2285_v40  ;;  %1789 = vmatpush3.bf16.msra.mxu0 %v2166_v19 }
 0x104   : > { %1917 = vrsqrt.f32 %v710_v22  ;;  %1790 = vmatprep.subr.bf16.mxu0 %v1990_v33 }
 0x105   : > { %v1234_v28 = vsel %vm856_vm6, %v1233_v24, %v1229_v11  ;;  %v671_v29 = vpop.xlane.xlu1 %670 }
 0x106   : > { %v1914_v30 = vpop.eup %1913  ;;  %v726_v9 = vmax.f32 %v671_v29, 1e-24 }
 0x107   : > { %v1061_v32 = vrot.slane %v1914_v30, %v2276_v21  ;;  %1792 = vmatpush3.bf16.msra.mxu0 %v2175_v37 }
 0x108   : > { %1919 = vrsqrt.f32 %v726_v9  ;;  %1793 = vmatprep.subr.bf16.mxu0 %v1990_v33 }
 0x109   : > { %v1062_v34 = vsel %vm863_vm7, %v1061_v32, %v1057_v4  ;;  %v641_v40 = vpop.xlane.xlu1 %640 }
 0x10a   : > { %v1916_v35 = vpop.eup %1915  ;;  %v711_v43 = vmax.f32 %v641_v40, 1e-24 }
 0x10b   : > { %v1238_v19 = vrot.slane %v1916_v35, %v2276_v21  ;;  %1795 = vmatpush3.bf16.msra.mxu0 %v2193_v46 }
 0x10c   : > { %1796 = vmatprep.subr.bf16.mxu0 %v1990_v33  ;;  %1921 = vrsqrt.f32 %v711_v43 }
 0x10d   : > { %v1239_v45 = vsel %vm863_vm7, %v1238_v19, %v1234_v28  ;;  %v673_v36 = vpop.xlane.xlu1 %672 }
 0x10e   : > { %v1918_v39 = vpop.eup %1917  ;;  %v727_v54 = vmax.f32 %v673_v36, 1e-24 }
 0x10f   : > { %v1066_v0 = vrot.slane %v1918_v39, %v2294_v52  ;;  %1798 = vmatpush3.bf16.msra.mxu0 %v2219_v59 }
 0x110   : > { %1799 = vmatprep.subr.bf16.mxu0 %v1990_v33  ;;  %1923 = vrsqrt.f32 %v727_v54 }
 0x111   : > { %v2404_v37 = vsel %vm870_vm8, %v1066_v0, %v1062_v34  ;;  %v643_v41 = vpop.xlane.xlu1 %642 }
 0x112   : > { %v1920_v42 = vpop.eup %1919  ;;  %v712_v48 = vmax.f32 %v643_v41, 1e-24 }
 0x113   : > { %v1243_v21 = vrot.slane %v1920_v42, %v2294_v52  ;;  %1801 = vmatpush3.bf16.msra.mxu0 %v2223_v1 }
 0x114   : > { %1802 = vmatprep.subr.bf16.mxu0 %v1990_v33  ;;  %1925 = vrsqrt.f32 %v712_v48 }
 0x115   : > { %v2410_v46 = vsel %vm870_vm8, %v1243_v21, %v1239_v45  ;;  %v675_v44 = vpop.xlane.xlu1 %674 }
 0x116   : > { %v728_v57 = vmax.f32 %v675_v44, 1e-24  ;;  %v1922_v26 = vpop.eup %1921 }
 0x117   : > { %1804 = vmatpush3.bf16.msra.mxu0 %v2229_v14  ;;  %v1071_v20 = vrot.slane %v1922_v26, %v2289_v25 }
 0x118   : > { %1927 = vrsqrt.f32 %v728_v57 }
 0x119   : > { %v645_v59 = vpop.xlane.xlu1 %644  ;;  %v1072_v9 = vsel %vm877_vm9, %v1071_v20, %v2404_v37 }
 0x11a   : > { %v713_v1 = vmax.f32 %v645_v59, 1e-24  ;;  %v1924_v6 = vpop.eup %1923 }
 0x11b   : > { %v1248_v22 = vrot.slane %v1924_v6, %v2289_v25 }
 0x11c   : > { %1929 = vrsqrt.f32 %v713_v1 }
 0x11d   : > { %v647_v31 = vpop.xlane.xlu1 %646  ;;  %v1249_v45 = vsel %vm877_vm9, %v1248_v22, %v2410_v46 }
 0x11e   : > { %v714_v33 = vmax.f32 %v647_v31, 1e-24  ;;  %v1926_v8 = vpop.eup %1925 }
 0x11f   : > { %v1076_v56 = vrot.slane %v1926_v8, %v2308_v16 }
 0x120   : > { %1931 = vrsqrt.f32 %v714_v33 }
 0x121   : > { %v679_v47 = vpop.xlane.xlu1 %678  ;;  %v1077_v35 = vsel %vm884_vm10, %v1076_v56, %v1072_v9 }
 0x122   : > { %v677_v52 = vpop.xlane.xlu0 %676  ;;  %v730_v61 = vmax.f32 %v679_v47, 1e-24  ;;  %v1928_v17 = vpop.eup %1927 }
 0x123   : > { %v729_v60 = vmax.f32 %v677_v52, 1e-24  ;;  %v1253_v28 = vrot.slane %v1928_v17, %v2308_v16 }
 0x125   : > { %v649_v49 = vpop.xlane.xlu1 %648  ;;  %1933 = vrsqrt.f32 %v729_v60  ;;  %v1254_v39 = vsel %vm884_vm10, %v1253_v28, %v1249_v45 }
 0x126   : > { %v715_v55 = vmax.f32 %v649_v49, 1e-24  ;;  %v1930_v11 = vpop.eup %1929 }
 0x127   : > { %v1081_v24 = vrot.slane %v1930_v11, %v2311_v7 }
 0x128   : > { %1935 = vrsqrt.f32 %v715_v55 }
 0x129   : > { %v681_v53 = vpop.xlane.xlu1 %680  ;;  %v1082_v16 = vsel %vm891_vm11, %v1081_v24, %v1077_v35 }
 0x12a   : > { %v731_v2 = vmax.f32 %v681_v53, 1e-24  ;;  %v1932_v15 = vpop.eup %1931 }
 0x12b   : > { %v1086_v29 = vrot.slane %v1932_v15, %v2315_v27 }
 0x12d   : > { %v651_v58 = vpop.xlane.xlu1 %650  ;;  %v1087_v0 = vsel %vm898_vm12, %v1086_v29, %v1082_v16 }
 0x12e   : > { %v716_v14 = vmax.f32 %v651_v58, 1e-24 }
 0x12f   : > { %v1934_v50 = vpop.eup %1933 }
 0x130   : > { %1937 = vrsqrt.f32 %v716_v14  ;;  %v1258_v32 = vrot.slane %v1934_v50, %v2311_v7 }
 0x131   : > { %v683_v63 = vpop.xlane.xlu1 %682  ;;  %1939 = vrsqrt.f32 %v730_v61 }
 0x132   : > { %v732_v3 = vmax.f32 %v683_v63, 1e-24  ;;  %1941 = vrsqrt.f32 %v731_v2  ;;  %v1936_v4 = vpop.eup %1935  ;;  %v1259_v7 = vsel %vm891_vm11, %v1258_v32, %v1254_v39 }
 0x133   : > { %v1091_v34 = vrot.slane %v1936_v4, %v2326_v38 }
 0x134   : > { %1943 = vrsqrt.f32 %v732_v3 }
 0x135   : > { %v653_v5 = vpop.xlane.xlu1 %652  ;;  %v1092_v41 = vsel %vm905_vm13, %v1091_v34, %v1087_v0 }
 0x136   : > { %v717_v51 = vmax.f32 %v653_v5, 1e-24 }
 0x138   : > { %1945 = vrsqrt.f32 %v717_v51 }
 0x139   : > { %v685_v13 = vpop.xlane.xlu1 %684 }
 0x13a   : > { %v733_v18 = vmax.f32 %v685_v13, 1e-24  ;;  %v1938_v12 = vpop.eup %1937 }
 0x13b   : > { %v1940_v30 = vpop.eup %1939  ;;  %v1096_v19 = vrot.slane %v1938_v12, %v2334_v62 }
 0x13c   : > { %1947 = vrsqrt.f32 %v733_v18  ;;  %v1942_v40 = vpop.eup %1941  ;;  %v1263_v21 = vrot.slane %v1940_v30, %v2315_v27 }
 0x13d   : > { %v1268_v37 = vrot.slane %v1942_v40, %v2326_v38  ;;  %v1097_v44 = vsel %vm912_vm14, %v1096_v19, %v1092_v41 }
 0x13e   : > { %v1944_v25 = vpop.eup %1943  ;;  %v1264_v49 = vsel %vm898_vm12, %v1263_v21, %v1259_v7 }
 0x13f   : > { %v1273_v46 = vrot.slane %v1944_v25, %v2334_v62  ;;  %v1269_v43 = vsel %vm905_vm13, %v1268_v37, %v1264_v49 }
 0x141   : > { %v1274_v54 = vsel %vm912_vm14, %v1273_v46, %v1269_v43 }
 0x142   : > { %v1946_v36 = vpop.eup %1945 }
 0x143   : > { %v1101_v42 = vrot.slane %v1946_v36, %v2349_v23 }
 0x145   : > { %v1102_v59 = vsel %vm919_vm15, %v1101_v42, %v1097_v44 }
 0x146   : > { %v1948_v31 = vpop.eup %1947  ;;  %v1110_v47 = vmul.f32 %v2370_v10, %v1102_v59 }
 0x147   : > { %v1278_v38 = vrot.slane %v1948_v31, %v2349_v23 }
 0x148   : > { %1696 = vmatmul.mubr.f32.vlgmr.msra.gmra.mrb[0].mxu1 %v1110_v47 }
 0x149   : > { %v1279_v27 = vsel %vm919_vm15, %v1278_v38, %v1274_v54 }
 0x14a   : > { %v1287_v62 = vmul.f32 %v2370_v10, %v1279_v27 }
 0x14c   : > { %1731 = vmatmul.mubr.f32.vlgmr.msra.gmra.mrb[2].mxu0 %v1287_v62 }
 0x1cd   : > { %v1002_v48 = vpop.f32.mrb[0].mxu0 }
 0x1ce   : > { %v1662_v53 = vpop.f32.mrb[1].mxu0  ;;  %1007 = vst [vmem:[%s438_s12] sm:$0xff] %v1002_v48 }
 0x21b   : > { %v1179_v57 = vpop.f32.mrb[0].mxu1 }
 0x21c   : > { %v1697_v23 = vpop.f32.mrb[1].mxu1  ;;  %1452 = vst [vmem:[%s438_s12 + $0x8] sm:$0xff] %v1179_v57 }
 0x21f   : > { %v1356_v52 = vpop.f32.mrb[2].mxu0 }
 0x220   : > { %v1732_v1 = vpop.f32.mrb[3].mxu0  ;;  %1454 = vst [vmem:[%s438_s12 + $0x10] sm:$0xff] %v1356_v52 }
 0x221 PF: > { %s13_s16 = sadd.s32 1, %s1987_s16   ;;  %s2468_s12 = smov %s1975_s13 }
 0x222   : > { %p10_p10 = scmp.ge.s32.totalorder %s13_s16, 4   ;;  %s2469_s13 = smov %s2048_s20 }
 0x223   : > { %s2470_s14 = smov %s1983_s15  ;;  %s2471_s15 = smov %s2473_s17 }
 0x224   :  { %12 = sbr.rel (!%p10_p10) target bundleno = 3 (0x3), region = 117 }

</bundles_post_ra>
